<compile_context>
chip_gen: v6e
topology: v6e:2x2x1
jax: 0.10.0
libtpu: 0.0.40
codegen_flags: <defaults>
</compile_context>

<pallas_src>
import jax
import jax.numpy as jnp
from jax.experimental import pallas as pl
from jax.experimental.pallas import tpu as pltpu

# ---------------- problem sizes (small, synthetic) ----------------
N_NODES = 16      # total nodes across the batch
F_IN = 32         # input feature dim
H_DIM = 32        # hidden dim of GCN layer 1
D_OUT = 32        # output dim of GCN layer 2
N_EDGES = 40      # number of directed edges
G_PAD = 8         # padded number of graphs for the pooling matmul (>= real graphs)
PAD_D = 128       # lane-dense padded width of the stored Z / G outputs


# -------- Pallas kernel: fused 3-view 2-layer GCN + add-pool readout --------
def fused_gcn_kernel(a0_ref, a2_ref, x0_ref, x1_ref, w1_ref, b1_ref,
                     w2_ref, b2_ref, p_ref, z_ref, g_ref):
    # a0 : (N, N) normalized adjacency of the original graph (shared by views 0, 1)
    # a2 : (N, N) normalized adjacency of the edge-dropped graph (view 2)
    # x0 : (N, F) original features (shared by views 0, 2)
    # x1 : (N, F) feature-masked features (view 1)
    # w1/b1 : (F, H) / (1, H)          -- unpadded 32-wide intermediates
    # w2/b2 : (H, 128) / (1, 128)      -- zero-padded past D_OUT (lane-dense store)
    # p  : (G_PAD, N) one-hot pooling matrix (global add pool, shared by all views)
    # z_ref : (3, N, 128)   g_ref : (3, G_PAD, 128)
    a0 = a0_ref[...]
    a2 = a2_ref[...]
    w1 = w1_ref[...]
    b1 = b1_ref[...]
    w2 = w2_ref[...]
    b2 = b2_ref[...]
    p = p_ref[...]

    # Layer-1 feature transform: only two X@W1 products needed (x2 == x0).
    xw0 = jnp.dot(x0_ref[...], w1, preferred_element_type=jnp.float32)   # (N, H)
    xw1 = jnp.dot(x1_ref[...], w1, preferred_element_type=jnp.float32)   # (N, H)

    # Layer-1 propagation + bias + ReLU (A1 == A0 since aug1 keeps edges).
    h0 = jnp.maximum(jnp.dot(a0, xw0, preferred_element_type=jnp.float32) + b1, 0.0)
    h1 = jnp.maximum(jnp.dot(a0, xw1, preferred_element_type=jnp.float32) + b1, 0.0)
    h2 = jnp.maximum(jnp.dot(a2, xw0, preferred_element_type=jnp.float32) + b1, 0.0)

    def layer2_and_pool(a, h, v):
        # (A @ H) first keeps the intermediate H_DIM-wide; only the final @W2
        # widens to the lane-dense 128-wide stored output.
        ah = jnp.dot(a, h, preferred_element_type=jnp.float32)           # (N, H)
        z = jnp.maximum(
            jnp.dot(ah, w2, preferred_element_type=jnp.float32) + b2, 0.0)  # (N, 128)
        z_ref[v] = z                                                      # unmasked vst
        g_ref[v] = jnp.dot(p, z, preferred_element_type=jnp.float32)     # (G_PAD, 128)

    layer2_and_pool(a0, h0, 0)   # original view
    layer2_and_pool(a0, h1, 1)   # feature-masked view (same adjacency)
    layer2_and_pool(a2, h2, 2)   # edge-dropped view  (same features)


@jax.jit
def fused_gcn_pallas(a0, a2, x0, x1, w1, b1, w2p, b2p, p):
    n, f = x0.shape
    h = w1.shape[1]
    d = w2p.shape[1]            # 128
    gp = p.shape[0]             # G_PAD
    # Accurate MAC count (no structural-zero work).
    flops = 2 * (2 * n * f * h       # two X @ W1
                 + 3 * n * n * h     # three A @ XW
                 + 3 * n * n * h     # three A @ H
                 + 3 * n * h * d     # three (AH) @ W2
                 + 3 * gp * n * d)   # three P @ Z
    bytes_accessed = 4 * (a0.size + a2.size + x0.size + x1.size + w1.size
                          + b1.size + w2p.size + b2p.size + p.size
                          + 3 * n * d + 3 * gp * d)
    z_all, g_all = pl.pallas_call(
        fused_gcn_kernel,
        out_shape=(
            jax.ShapeDtypeStruct((3, n, d), jnp.float32),
            jax.ShapeDtypeStruct((3, gp, d), jnp.float32),
        ),
        in_specs=[pl.BlockSpec(memory_space=pltpu.MemorySpace.VMEM)] * 9,
        out_specs=(
            pl.BlockSpec(memory_space=pltpu.MemorySpace.VMEM),
            pl.BlockSpec(memory_space=pltpu.MemorySpace.VMEM),
        ),
        cost_estimate=pl.CostEstimate(flops=flops, transcendentals=0,
                                      bytes_accessed=bytes_accessed),
    )(a0, a2, x0, x1, w1, b1, w2p, b2p, p)
    return z_all, g_all


# ---------------- JAX glue: adjacency / pooling construction ----------------
def build_norm_adj(edge_index, edge_weight, num_nodes):
    """Dense GCN-normalized adjacency with self-loops: D^-1/2 (A + I) D^-1/2."""
    # TODO(synk): the COO scatter-add message-passing build stays in plain JAX
    # (serial scatter on TPU); only the dense GCN math runs in the kernel.
    src, dst = edge_index[0], edge_index[1]
    a = jnp.zeros((num_nodes, num_nodes), jnp.float32)
    a = a.at[dst, src].add(edge_weight)
    a = a + jnp.eye(num_nodes, dtype=jnp.float32)
    deg = a.sum(axis=1)
    dinv = jnp.where(deg > 0, 1.0 / jnp.sqrt(deg), 0.0)
    return a * dinv[:, None] * dinv[None, :]


def build_pool_matrix(batch, g_pad):
    """One-hot [G_pad, N] pooling matrix (global add pool)."""
    return (batch[None, :] == jnp.arange(g_pad, dtype=batch.dtype)[:, None]
            ).astype(jnp.float32)


def prepare_padded_params(params):
    """One-time parameter prep (hoisted out of the per-forward path).

    Only W2/b2 are padded (to the lane-dense 128-wide stored output); the
    layer-1 intermediate stays at H_DIM so the kernel does no work on zero K.
    Padding lanes stay exactly zero: zero weights + zero bias + ReLU.
    """
    w1, b1, w2, b2 = params
    w2p = jnp.zeros((H_DIM, PAD_D), jnp.float32).at[:, :D_OUT].set(w2)
    b2p = jnp.zeros((1, PAD_D), jnp.float32).at[:, :D_OUT].set(b2)
    return (w1, b1, w2p, b2p)


# ---------------- Augmentors (deterministic) ----------------
def make_augmentors(key, num_features, num_edges):
    k1, k2 = jax.random.split(key)
    feat_mask = jax.random.bernoulli(k1, p=0.7, shape=(1, num_features)
                                     ).astype(jnp.float32)
    edge_keep = jax.random.bernoulli(k2, p=0.7, shape=(num_edges,)
                                     ).astype(jnp.float32)

    def aug1(x, edge_index):  # feature masking (edges untouched)
        return x * feat_mask, edge_index, None

    def aug2(x, edge_index):  # edge removing (as zeroed edge weights)
        return x, edge_index, edge_keep

    return aug1, aug2


# ---------------- Encoder.forward equivalent (fused, single kernel) ----------
def encoder_forward(x, edge_index, batch, padded_params, augmentor, num_graphs):
    aug1, aug2 = augmentor
    x1, edge_index1, edge_weight1 = aug1(x, edge_index)   # features masked, edges kept
    x2, edge_index2, edge_weight2 = aug2(x, edge_index)   # features kept, edges dropped

    w1, b1, w2p, b2p = padded_params
    n = x.shape[0]
    ones = jnp.ones((edge_index.shape[1],), jnp.float32)

    # Exploit the augmentor structure:
    #   * aug1 (feature masking) leaves edges untouched -> A1 == A0, so the
    #     redundant scatter-add adjacency build for view 1 is dropped.
    #   * aug2 (edge removing) leaves features untouched -> x2 == x, so only
    #     two feature matrices are sent to the kernel.
    a0 = build_norm_adj(edge_index, ones, n)
    a2 = build_norm_adj(edge_index2,
                        ones if edge_weight2 is None else edge_weight2, n)
    p = build_pool_matrix(batch, G_PAD)

    z_all, g_all = fused_gcn_pallas(a0, a2, x, x1, w1, b1, w2p, b2p, p)

    # Slice padding / views back off (wrapper-side layout plumbing).
    z = z_all[0, :, :D_OUT]
    z1 = z_all[1, :, :D_OUT]
    z2 = z_all[2, :, :D_OUT]
    g = g_all[0, :num_graphs, :D_OUT]
    g1 = g_all[1, :num_graphs, :D_OUT]
    g2 = g_all[2, :num_graphs, :D_OUT]
    return z, g, z1, z2, g1, g2


# ---------------- pure-JAX reference (for correctness check) ----------------
def _gcn_ref(a, xx, w1, b1, w2, b2, p):
    h = jnp.maximum(a @ (xx @ w1) + b1, 0.0)
    z = jnp.maximum(a @ (h @ w2) + b2, 0.0)
    return z, p @ z


def encoder_forward_ref(x, edge_index, batch, params, augmentor, num_graphs):
    aug1, aug2 = augmentor
    x1, ei1, ew1 = aug1(x, edge_index)
    x2, ei2, ew2 = aug2(x, edge_index)
    w1, b1, w2, b2 = params
    n = x.shape[0]
    ones = jnp.ones((edge_index.shape[1],), jnp.float32)
    a0 = build_norm_adj(edge_index, ones, n)
    a1 = build_norm_adj(ei1, ones if ew1 is None else ew1, n)
    a2 = build_norm_adj(ei2, ones if ew2 is None else ew2, n)
    p = build_pool_matrix(batch, G_PAD)
    z, g = _gcn_ref(a0, x, w1, b1, w2, b2, p)
    z1, g1 = _gcn_ref(a1, x1, w1, b1, w2, b2, p)
    z2, g2 = _gcn_ref(a2, x2, w1, b1, w2, b2, p)
    return z, g[:num_graphs], z1, z2, g1[:num_graphs], g2[:num_graphs]


# ---------------- main ----------------
if __name__ == "__main__":
    key = jax.random.PRNGKey(0)
    kx, ke, kw1, kw2, kaug = jax.random.split(key, 5)

    # node features
    x = jax.random.normal(kx, (N_NODES, F_IN), dtype=jnp.float32)

    # random directed edges
    edge_index = jax.random.randint(ke, (2, N_EDGES), 0, N_NODES, dtype=jnp.int32)

    # batch assignment: first 8 nodes -> graph 0, last 8 -> graph 1
    batch = jnp.concatenate(
        [jnp.zeros((8,), jnp.int32), jnp.ones((8,), jnp.int32)])
    num_graphs = 2

    # deterministic GCN parameters
    w1 = jax.random.normal(kw1, (F_IN, H_DIM), jnp.float32) * (1.0 / jnp.sqrt(F_IN))
    b1 = jnp.zeros((1, H_DIM), jnp.float32)
    w2 = jax.random.normal(kw2, (H_DIM, D_OUT), jnp.float32) * (1.0 / jnp.sqrt(H_DIM))
    b2 = jnp.zeros((1, D_OUT), jnp.float32)
    params = (w1, b1, w2, b2)

    # One-time padded-parameter prep (hoisted out of the forward path).
    padded_params = prepare_padded_params(params)
    padded_params = jax.block_until_ready(padded_params)

    augmentor = make_augmentors(kaug, F_IN, N_EDGES)

    outs = encoder_forward(x, edge_index, batch, padded_params, augmentor,
                           num_graphs)
    outs = jax.block_until_ready(outs)
    z, g, z1, z2, g1, g2 = outs

    # shape / finiteness checks
    assert z.shape == (N_NODES, D_OUT) and z1.shape == z.shape and z2.shape == z.shape
    assert g.shape == (num_graphs, D_OUT) and g1.shape == g.shape and g2.shape == g.shape
    assert all(bool(jnp.all(jnp.isfinite(o))) for o in outs)

    # numerical check against pure-JAX reference of the same forward pass
    refs = encoder_forward_ref(x, edge_index, batch, params, augmentor, num_graphs)
    for got, want in zip(outs, refs):
        assert jnp.allclose(got, want, rtol=1e-2, atol=1e-2), "mismatch vs reference"

    print("KERNEL_OK")
</pallas_src>

<mosaic_0001>
module attributes {stable_mosaic.version = 11 : i64} {
  func.func @fused_gcn_kernel(%arg0: memref<16x16xf32, #tpu.memory_space<vmem>>, %arg1: memref<16x16xf32, #tpu.memory_space<vmem>>, %arg2: memref<16x32xf32, #tpu.memory_space<vmem>>, %arg3: memref<16x32xf32, #tpu.memory_space<vmem>>, %arg4: memref<32x32xf32, #tpu.memory_space<vmem>>, %arg5: memref<1x32xf32, #tpu.memory_space<vmem>>, %arg6: memref<32x128xf32, #tpu.memory_space<vmem>>, %arg7: memref<1x128xf32, #tpu.memory_space<vmem>>, %arg8: memref<8x16xf32, #tpu.memory_space<vmem>>, %arg9: memref<3x16x128xf32, #tpu.memory_space<vmem>>, %arg10: memref<3x8x128xf32, #tpu.memory_space<vmem>>) attributes {dimension_semantics = [], scalar_prefetch = 0 : i64, scratch_operands = 0 : i64, tpu.core_type = #tpu.core_type<tc>} {
    %c0 = arith.constant 0 : index
    %c0_0 = arith.constant 0 : index
    %0 = vector.load %arg0[%c0, %c0_0] : memref<16x16xf32, #tpu.memory_space<vmem>>, vector<16x16xf32>
    %c0_1 = arith.constant 0 : index
    %c0_2 = arith.constant 0 : index
    %1 = vector.load %arg1[%c0_1, %c0_2] : memref<16x16xf32, #tpu.memory_space<vmem>>, vector<16x16xf32>
    %c0_3 = arith.constant 0 : index
    %c0_4 = arith.constant 0 : index
    %2 = vector.load %arg4[%c0_3, %c0_4] : memref<32x32xf32, #tpu.memory_space<vmem>>, vector<32x32xf32>
    %c0_5 = arith.constant 0 : index
    %c0_6 = arith.constant 0 : index
    %3 = vector.load %arg5[%c0_5, %c0_6] : memref<1x32xf32, #tpu.memory_space<vmem>>, vector<1x32xf32>
    %c0_7 = arith.constant 0 : index
    %c0_8 = arith.constant 0 : index
    %4 = vector.load %arg6[%c0_7, %c0_8] : memref<32x128xf32, #tpu.memory_space<vmem>>, vector<32x128xf32>
    %c0_9 = arith.constant 0 : index
    %c0_10 = arith.constant 0 : index
    %5 = vector.load %arg7[%c0_9, %c0_10] : memref<1x128xf32, #tpu.memory_space<vmem>>, vector<1x128xf32>
    %c0_11 = arith.constant 0 : index
    %c0_12 = arith.constant 0 : index
    %6 = vector.load %arg8[%c0_11, %c0_12] : memref<8x16xf32, #tpu.memory_space<vmem>>, vector<8x16xf32>
    %c0_13 = arith.constant 0 : index
    %c0_14 = arith.constant 0 : index
    %7 = vector.load %arg2[%c0_13, %c0_14] : memref<16x32xf32, #tpu.memory_space<vmem>>, vector<16x32xf32>
    %cst = arith.constant dense<0.000000e+00> : vector<16x32xf32>
    %8 = tpu.matmul %7, %2, %cst {dimension_numbers = #tpu.dot_dimension_numbers<[1], [0], [0], [1], [0, 0, 1, 1], [], []>} : vector<16x32xf32>, vector<32x32xf32>, vector<16x32xf32> -> vector<16x32xf32>
    %c0_15 = arith.constant 0 : index
    %c0_16 = arith.constant 0 : index
    %9 = vector.load %arg3[%c0_15, %c0_16] : memref<16x32xf32, #tpu.memory_space<vmem>>, vector<16x32xf32>
    %cst_17 = arith.constant dense<0.000000e+00> : vector<16x32xf32>
    %10 = tpu.matmul %9, %2, %cst_17 {dimension_numbers = #tpu.dot_dimension_numbers<[1], [0], [0], [1], [0, 0, 1, 1], [], []>} : vector<16x32xf32>, vector<32x32xf32>, vector<16x32xf32> -> vector<16x32xf32>
    %cst_18 = arith.constant dense<0.000000e+00> : vector<16x32xf32>
    %11 = tpu.matmul %0, %8, %cst_18 {dimension_numbers = #tpu.dot_dimension_numbers<[1], [0], [0], [1], [0, 0, 1, 1], [], []>} : vector<16x16xf32>, vector<16x32xf32>, vector<16x32xf32> -> vector<16x32xf32>
    %12 = vector.broadcast %3 : vector<1x32xf32> to vector<16x32xf32>
    %13 = arith.addf %11, %12 : vector<16x32xf32>
    %cst_19 = arith.constant 0.000000e+00 : f32
    %14 = vector.broadcast %cst_19 : f32 to vector<16x32xf32>
    %15 = arith.maximumf %13, %14 : vector<16x32xf32>
    %cst_20 = arith.constant dense<0.000000e+00> : vector<16x32xf32>
    %16 = tpu.matmul %0, %10, %cst_20 {dimension_numbers = #tpu.dot_dimension_numbers<[1], [0], [0], [1], [0, 0, 1, 1], [], []>} : vector<16x16xf32>, vector<16x32xf32>, vector<16x32xf32> -> vector<16x32xf32>
    %17 = vector.broadcast %3 : vector<1x32xf32> to vector<16x32xf32>
    %18 = arith.addf %16, %17 : vector<16x32xf32>
    %cst_21 = arith.constant 0.000000e+00 : f32
    %19 = vector.broadcast %cst_21 : f32 to vector<16x32xf32>
    %20 = arith.maximumf %18, %19 : vector<16x32xf32>
    %cst_22 = arith.constant dense<0.000000e+00> : vector<16x32xf32>
    %21 = tpu.matmul %1, %8, %cst_22 {dimension_numbers = #tpu.dot_dimension_numbers<[1], [0], [0], [1], [0, 0, 1, 1], [], []>} : vector<16x16xf32>, vector<16x32xf32>, vector<16x32xf32> -> vector<16x32xf32>
    %22 = vector.broadcast %3 : vector<1x32xf32> to vector<16x32xf32>
    %23 = arith.addf %21, %22 : vector<16x32xf32>
    %cst_23 = arith.constant 0.000000e+00 : f32
    %24 = vector.broadcast %cst_23 : f32 to vector<16x32xf32>
    %25 = arith.maximumf %23, %24 : vector<16x32xf32>
    %cst_24 = arith.constant dense<0.000000e+00> : vector<16x32xf32>
    %26 = tpu.matmul %0, %15, %cst_24 {dimension_numbers = #tpu.dot_dimension_numbers<[1], [0], [0], [1], [0, 0, 1, 1], [], []>} : vector<16x16xf32>, vector<16x32xf32>, vector<16x32xf32> -> vector<16x32xf32>
    %cst_25 = arith.constant dense<0.000000e+00> : vector<16x128xf32>
    %27 = tpu.matmul %26, %4, %cst_25 {dimension_numbers = #tpu.dot_dimension_numbers<[1], [0], [0], [1], [0, 0, 1, 1], [], []>} : vector<16x32xf32>, vector<32x128xf32>, vector<16x128xf32> -> vector<16x128xf32>
    %28 = vector.broadcast %5 : vector<1x128xf32> to vector<16x128xf32>
    %29 = arith.addf %27, %28 : vector<16x128xf32>
    %cst_26 = arith.constant 0.000000e+00 : f32
    %30 = vector.broadcast %cst_26 : f32 to vector<16x128xf32>
    %31 = arith.maximumf %29, %30 : vector<16x128xf32>
    %c0_27 = arith.constant 0 : index
    %c0_28 = arith.constant 0 : index
    %c0_29 = arith.constant 0 : index
    %32 = vector.load %arg9[%c0_27, %c0_28, %c0_29] : memref<3x16x128xf32, #tpu.memory_space<vmem>>, vector<1x16x128xf32>
    %33 = vector.shape_cast %32 : vector<1x16x128xf32> to vector<16x128xf32>
    %34 = vector.shape_cast %31 : vector<16x128xf32> to vector<1x16x128xf32>
    tpu.vector_store %arg9[%c0_27, %c0_28, %c0_29], %34 {strides = array<i32>} : memref<3x16x128xf32, #tpu.memory_space<vmem>>, vector<1x16x128xf32>,
    %cst_30 = arith.constant dense<0.000000e+00> : vector<8x128xf32>
    %35 = tpu.matmul %6, %31, %cst_30 {dimension_numbers = #tpu.dot_dimension_numbers<[1], [0], [0], [1], [0, 0, 1, 1], [], []>} : vector<8x16xf32>, vector<16x128xf32>, vector<8x128xf32> -> vector<8x128xf32>
    %c0_31 = arith.constant 0 : index
    %c0_32 = arith.constant 0 : index
    %c0_33 = arith.constant 0 : index
    %36 = vector.load %arg10[%c0_31, %c0_32, %c0_33] : memref<3x8x128xf32, #tpu.memory_space<vmem>>, vector<1x8x128xf32>
    %37 = vector.shape_cast %36 : vector<1x8x128xf32> to vector<8x128xf32>
    %38 = vector.shape_cast %35 : vector<8x128xf32> to vector<1x8x128xf32>
    tpu.vector_store %arg10[%c0_31, %c0_32, %c0_33], %38 {strides = array<i32>} : memref<3x8x128xf32, #tpu.memory_space<vmem>>, vector<1x8x128xf32>,
    %cst_34 = arith.constant dense<0.000000e+00> : vector<16x32xf32>
    %39 = tpu.matmul %0, %20, %cst_34 {dimension_numbers = #tpu.dot_dimension_numbers<[1], [0], [0], [1], [0, 0, 1, 1], [], []>} : vector<16x16xf32>, vector<16x32xf32>, vector<16x32xf32> -> vector<16x32xf32>
    %cst_35 = arith.constant dense<0.000000e+00> : vector<16x128xf32>
    %40 = tpu.matmul %39, %4, %cst_35 {dimension_numbers = #tpu.dot_dimension_numbers<[1], [0], [0], [1], [0, 0, 1, 1], [], []>} : vector<16x32xf32>, vector<32x128xf32>, vector<16x128xf32> -> vector<16x128xf32>
    %41 = vector.broadcast %5 : vector<1x128xf32> to vector<16x128xf32>
    %42 = arith.addf %40, %41 : vector<16x128xf32>
    %cst_36 = arith.constant 0.000000e+00 : f32
    %43 = vector.broadcast %cst_36 : f32 to vector<16x128xf32>
    %44 = arith.maximumf %42, %43 : vector<16x128xf32>
    %c1 = arith.constant 1 : index
    %c0_37 = arith.constant 0 : index
    %c0_38 = arith.constant 0 : index
    %45 = vector.load %arg9[%c1, %c0_37, %c0_38] : memref<3x16x128xf32, #tpu.memory_space<vmem>>, vector<1x16x128xf32>
    %46 = vector.shape_cast %45 : vector<1x16x128xf32> to vector<16x128xf32>
    %47 = vector.shape_cast %44 : vector<16x128xf32> to vector<1x16x128xf32>
    tpu.vector_store %arg9[%c1, %c0_37, %c0_38], %47 {strides = array<i32>} : memref<3x16x128xf32, #tpu.memory_space<vmem>>, vector<1x16x128xf32>,
    %cst_39 = arith.constant dense<0.000000e+00> : vector<8x128xf32>
    %48 = tpu.matmul %6, %44, %cst_39 {dimension_numbers = #tpu.dot_dimension_numbers<[1], [0], [0], [1], [0, 0, 1, 1], [], []>} : vector<8x16xf32>, vector<16x128xf32>, vector<8x128xf32> -> vector<8x128xf32>
    %c1_40 = arith.constant 1 : index
    %c0_41 = arith.constant 0 : index
    %c0_42 = arith.constant 0 : index
    %49 = vector.load %arg10[%c1_40, %c0_41, %c0_42] : memref<3x8x128xf32, #tpu.memory_space<vmem>>, vector<1x8x128xf32>
    %50 = vector.shape_cast %49 : vector<1x8x128xf32> to vector<8x128xf32>
    %51 = vector.shape_cast %48 : vector<8x128xf32> to vector<1x8x128xf32>
    tpu.vector_store %arg10[%c1_40, %c0_41, %c0_42], %51 {strides = array<i32>} : memref<3x8x128xf32, #tpu.memory_space<vmem>>, vector<1x8x128xf32>,
    %cst_43 = arith.constant dense<0.000000e+00> : vector<16x32xf32>
    %52 = tpu.matmul %1, %25, %cst_43 {dimension_numbers = #tpu.dot_dimension_numbers<[1], [0], [0], [1], [0, 0, 1, 1], [], []>} : vector<16x16xf32>, vector<16x32xf32>, vector<16x32xf32> -> vector<16x32xf32>
    %cst_44 = arith.constant dense<0.000000e+00> : vector<16x128xf32>
    %53 = tpu.matmul %52, %4, %cst_44 {dimension_numbers = #tpu.dot_dimension_numbers<[1], [0], [0], [1], [0, 0, 1, 1], [], []>} : vector<16x32xf32>, vector<32x128xf32>, vector<16x128xf32> -> vector<16x128xf32>
    %54 = vector.broadcast %5 : vector<1x128xf32> to vector<16x128xf32>
    %55 = arith.addf %53, %54 : vector<16x128xf32>
    %cst_45 = arith.constant 0.000000e+00 : f32
    %56 = vector.broadcast %cst_45 : f32 to vector<16x128xf32>
    %57 = arith.maximumf %55, %56 : vector<16x128xf32>
    %c2 = arith.constant 2 : index
    %c0_46 = arith.constant 0 : index
    %c0_47 = arith.constant 0 : index
    %58 = vector.load %arg9[%c2, %c0_46, %c0_47] : memref<3x16x128xf32, #tpu.memory_space<vmem>>, vector<1x16x128xf32>
    %59 = vector.shape_cast %58 : vector<1x16x128xf32> to vector<16x128xf32>
    %60 = vector.shape_cast %57 : vector<16x128xf32> to vector<1x16x128xf32>
    tpu.vector_store %arg9[%c2, %c0_46, %c0_47], %60 {strides = array<i32>} : memref<3x16x128xf32, #tpu.memory_space<vmem>>, vector<1x16x128xf32>,
    %cst_48 = arith.constant dense<0.000000e+00> : vector<8x128xf32>
    %61 = tpu.matmul %6, %57, %cst_48 {dimension_numbers = #tpu.dot_dimension_numbers<[1], [0], [0], [1], [0, 0, 1, 1], [], []>} : vector<8x16xf32>, vector<16x128xf32>, vector<8x128xf32> -> vector<8x128xf32>
    %c2_49 = arith.constant 2 : index
    %c0_50 = arith.constant 0 : index
    %c0_51 = arith.constant 0 : index
    %62 = vector.load %arg10[%c2_49, %c0_50, %c0_51] : memref<3x8x128xf32, #tpu.memory_space<vmem>>, vector<1x8x128xf32>
    %63 = vector.shape_cast %62 : vector<1x8x128xf32> to vector<8x128xf32>
    %64 = vector.shape_cast %61 : vector<8x128xf32> to vector<1x8x128xf32>
    tpu.vector_store %arg10[%c2_49, %c0_50, %c0_51], %64 {strides = array<i32>} : memref<3x8x128xf32, #tpu.memory_space<vmem>>, vector<1x8x128xf32>,
    return
  }
}

</mosaic_0001>

<bundles_post_ra>
// kernel: fused_gcn_pallas.1
= control target key start
LH: loop header
LB: loop body
LE: loop exit
PB: predicated region body
PF: predicated region fallthrough
CT: control target
= control target key end

     0   :  { %16 = vsyncpa [#allocation3], 0  ;;  %s1910_s0 = inlined_call_operand.hbm [shape: f32[16,16], index: 0, kind: input, shape index: {}]   ;;  %s1911_s1 = inlined_call_operand.hbm [shape: f32[16,16], index: 1, kind: input, shape index: {}]   ;;  %s1912_s2 = inlined_call_operand.hbm [shape: f32[16,32], index: 2, kind: input, shape index: {}]   ;;  %s1913_s3 = inlined_call_operand.hbm [shape: f32[16,32], index: 3, kind: input, shape index: {}]   ;;  %s1914_s4 = inlined_call_operand.hbm [shape: f32[32,32], index: 4, kind: input, shape index: {}]   ;;  %s1915_s5 = inlined_call_operand.vmem [shape: f32[1,32], index: 5, kind: input, shape index: {}]   ;;  %s1916_s6 = inlined_call_operand.hbm [shape: f32[32,128], index: 6, kind: input, shape index: {}]   ;;  %s1917_s7 = inlined_call_operand.vmem [shape: f32[1,128], index: 7, kind: input, shape index: {}]   ;;  %s1918_s8 = inlined_call_operand.vmem [shape: f32[8,16], index: 8, kind: input, shape index: {}]   ;;  %s1919_s9 = inlined_call_operand.hbm [shape: f32[3,16,128], index: 9, kind: output, shape index: {0}]   ;;  %s1920_s10 = inlined_call_operand.hbm [shape: f32[3,8,128], index: 10, kind: output, shape index: {1}]  }
   0x1   :  { %17 = vsyncpa [#allocation6], 0 }
   0x2   :  { %18 = vsyncpa [#allocation9], 0 }
   0x3   :  { %19 = vsyncpa [#allocation12], 0 }
   0x4   :  { %20 = vsyncpa [#allocation4], 0 }
   0x5   :  { %21 = vsyncpa [#allocation15], 0  ;;  %s1684_s13 = smov [#allocation5]   ;;  %s1685_s15 = smov [#allocation8]  }
   0x6   :  { %s39_s14 = sshll.u32 %s1684_s13, 4  ;;  %s63_s16 = sshll.u32 %s1685_s15, 4  ;;  %s40_s14 = int_to_ptr.vmem [resolvable:$true] %s39_s14  ;;  %s64_s16 = int_to_ptr.vmem [resolvable:$true] %s63_s16 }
   0x7   :  { %s1520_s17 = scalar_lea.vmem %s40_s14, 256  ;;  %p1525_p1 = scmp.lt.s32.totalorder %s40_s14, %s40_s14 }
   0x8   :  { %p1521_p0 = scmp.ne.s32.totalorder %s40_s14, %s1520_s17  ;;  %p1526_p2 = scmp.lt.s32.totalorder %s1520_s17, %s1520_s17 }
   0xa   :  { %p1527_p3 = por %p1526_p2, %p1525_p1 }
   0xc   :  { %p1528_p4 = pnand %p1527_p3, %p1521_p0 }
   0xe   :  { %1531 = shalt.err (!%p1528_p4)
}
   0xf   :  { %s1686_s18 = smov 128   ;;  %s1687_s19 = smov 8  }
  0x10   :  { %45 = dma.hbm_to_vmem [thread:$0]  %s1911_s1, 256, %s40_s14, [#allocation6], %s1686_s18, %s1686_s18, %s1687_s19  }
  0x11   :  { %s1540_s22 = scalar_lea.vmem %s64_s16, 256  ;;  %p1545_p6 = scmp.lt.s32.totalorder %s64_s16, %s64_s16 }
  0x12   :  { %p1541_p5 = scmp.ne.s32.totalorder %s64_s16, %s1540_s22  ;;  %p1546_p7 = scmp.lt.s32.totalorder %s1540_s22, %s1540_s22 }
  0x14   :  { %p1547_p8 = por %p1546_p7, %p1545_p6 }
  0x16   :  { %p1548_p9 = pnand %p1547_p8, %p1541_p5 }
  0x18   :  { %1551 = shalt.err (!%p1548_p9)
}
  0x19   :  { %69 = dma.hbm_to_vmem [thread:$0]  %s1913_s3, 256, %s64_s16, [#allocation9], %s1686_s18, %s1686_s18, %s1687_s19  }
  0x1a   :  { %s1688_s25 = smov [#allocation2]   ;;  %s1689_s27 = smov [#allocation7]  }
  0x1b   :  { %s27_s26 = sshll.u32 %s1688_s25, 4  ;;  %s51_s28 = sshll.u32 %s1689_s27, 4  ;;  %s28_s26 = int_to_ptr.vmem [resolvable:$true] %s27_s26  ;;  %s52_s28 = int_to_ptr.vmem [resolvable:$true] %s51_s28 }
  0x1c   :  { %s1560_s1 = scalar_lea.vmem %s28_s26, 256  ;;  %p1565_p11 = scmp.lt.s32.totalorder %s28_s26, %s28_s26 }
  0x1d   :  { %p1561_p10 = scmp.ne.s32.totalorder %s28_s26, %s1560_s1  ;;  %p1566_p12 = scmp.lt.s32.totalorder %s1560_s1, %s1560_s1 }
  0x1f   :  { %p1567_p13 = por %p1566_p12, %p1565_p11 }
  0x21   :  { %p1568_p0 = pnand %p1567_p13, %p1561_p10 }
  0x23   :  { %1571 = shalt.err (!%p1568_p0)
}
  0x24   :  { %33 = dma.hbm_to_vmem [thread:$0]  %s1910_s0, 256, %s28_s26, [#allocation3], %s1686_s18, %s1686_s18, %s1687_s19  }
  0x25   :  { %s1580_s3 = scalar_lea.vmem %s52_s28, 256  ;;  %p1585_p2 = scmp.lt.s32.totalorder %s52_s28, %s52_s28 }
  0x26   :  { %p1581_p1 = scmp.ne.s32.totalorder %s52_s28, %s1580_s3  ;;  %p1586_p3 = scmp.lt.s32.totalorder %s1580_s3, %s1580_s3 }
  0x28   :  { %p1587_p4 = por %p1586_p3, %p1585_p2 }
  0x2a   :  { %p1588_p5 = pnand %p1587_p4, %p1581_p1 }
  0x2c   :  { %1591 = shalt.err (!%p1588_p5)
}
  0x2d   :  { %57 = dma.hbm_to_vmem [thread:$0]  %s1912_s2, 256, %s52_s28, [#allocation6], %s1686_s18, %s1686_s18, %s1687_s19  }
  0x2e   :  { %s1690_s13 = smov [#allocation10]   ;;  %s1691_s15 = smov [#allocation11]  }
  0x2f   :  { %s75_s14 = sshll.u32 %s1690_s13, 4  ;;  %s89_s16 = sshll.u32 %s1691_s15, 4  ;;  %s76_s14 = int_to_ptr.vmem [resolvable:$true] %s75_s14  ;;  %s90_s16 = int_to_ptr.vmem [resolvable:$true] %s89_s16 }
  0x30   :  { %s1600_s0 = scalar_lea.vmem %s76_s14, 512  ;;  %p1605_p7 = scmp.lt.s32.totalorder %s76_s14, %s76_s14 }
  0x31   :  { %p1601_p6 = scmp.ne.s32.totalorder %s76_s14, %s1600_s0  ;;  %p1606_p8 = scmp.lt.s32.totalorder %s1600_s0, %s1600_s0 }
  0x33   :  { %p1607_p9 = por %p1606_p8, %p1605_p7 }
  0x35   :  { %p1608_p10 = pnand %p1607_p9, %p1601_p6 }
  0x37   :  { %1611 = shalt.err (!%p1608_p10)
}
  0x38   :  { %81 = dma.hbm_to_vmem [thread:$0]  %s1914_s4, 512, %s76_s14, [#allocation9], %s1686_s18, %s1686_s18, %s1687_s19  }
  0x39   :  { %s1620_s2 = scalar_lea.vmem %s90_s16, 512  ;;  %p1625_p12 = scmp.lt.s32.totalorder %s90_s16, %s90_s16 }
  0x3a   :  { %p1621_p11 = scmp.ne.s32.totalorder %s90_s16, %s1620_s2  ;;  %p1626_p13 = scmp.lt.s32.totalorder %s1620_s2, %s1620_s2 }
  0x3c   :  { %p1627_p0 = por %p1626_p13, %p1625_p12 }
  0x3e   :  { %p1628_p1 = pnand %p1627_p0, %p1621_p11 }
  0x40   :  { %1631 = shalt.err (!%p1628_p1)
}
  0x41   :  { %95 = dma.hbm_to_vmem [thread:$0]  %s1916_s6, 512, %s90_s16, [#allocation12], %s1686_s18, %s1686_s18, %s1687_s19  }
  0x42   :  { %1672 = dma.done.wait [#allocation3], 256  }
  0x43   :  { %1673 = vsyncadd [#allocation3], 4294967040 }
  0x44   :  { %1674 = dma.done.wait [#allocation6], 512  }
  0x45   :  { %1675 = vsyncadd [#allocation6], 4294966784 }
  0x46   :  { %1676 = dma.done.wait [#allocation9], 768  }
  0x47   :  { %1677 = vsyncadd [#allocation9], 4294966528 }
  0x48   :  { %1678 = dma.done.wait [#allocation12], 512  }
  0x49   :  { %1679 = vsyncadd [#allocation12], 4294966784  ;;  %vm135_vm0 = vcmask 261120   ;;  %v125_v0 = vld [vmem:[#allocation10 + $0x18] sm:$0xff]  ;;  %v124_v1 = vld [vmem:[#allocation10 + $0x10] sm:$0xff]  ;;  %vm306_vm1 = vcmask 130048  }
  0x4a   :  { %1382 = vmatprep.subr.mxu0 %v125_v0  ;;  %v133_v2 = vld [vmem:[#allocation7] sm:$0xff]  ;;  %1393 = vmatprep.subr.mxu1 %v125_v0  ;;  %v123_v3 = vld [vmem:[#allocation10 + $0x8] sm:$0xff]  ;;  %v217_v6 = vld [vmem:[#allocation8] sm:$0xff]  ;;  %v1692_v31 = vmov 0.0   ;;  %vm1693_vm2 = vmmov 0  }
  0x4b   :  { %1383 = vmatpush3.msra.mxu0 %v125_v0  ;;  %1390 = vmatprep.mubr.msk.f32.mxu0 %vm135_vm0, %v133_v2  ;;  %v122_v4 = vld [vmem:[#allocation10] sm:$0xff]  ;;  %v134_v5 = vld [vmem:[#allocation7 + $0x8] sm:$0xff]  ;;  %v218_v7 = vld [vmem:[#allocation8 + $0x8] sm:$0xff] }
  0x4c   :  { %1384 = vmatprep.subr.mxu0 %v124_v1  ;;  %1394 = vmatpush3.msra.mxu1 %v125_v0  ;;  %v1791_v8 = vld [vmem:[#allocation2] sm:$0xff]  ;;  %v1797_v11 = vld [vmem:[#allocation2 + $0x8] sm:$0xff]  ;;  %v1805_v14 = vld [vmem:[#allocation5] sm:$0xff] }
  0x4d   :  { %1385 = vmatpush3.msra.mxu0 %v124_v1  ;;  %1395 = vmatprep.subr.mxu1 %v124_v1  ;;  %v1807_v15 = vld [vmem:[#allocation5 + $0x8] sm:$0xff]  ;;  %v1815_v17 = vld [vmem:[#allocation11 + $0x10] sm:$0xff]  ;;  %v1824_v18 = vld [vmem:[%s1915_s5] ss:$0 sm:$0xff] }
  0x4e   :  { %1386 = vmatprep.subr.mxu0 %v123_v3  ;;  %1396 = vmatpush3.msra.mxu1 %v124_v1  ;;  %v1813_v16 = vld [vmem:[#allocation11 + $0x18] sm:$0xff]  ;;  %v1830_v25 = vld [vmem:[#allocation11 + $0x8] sm:$0xff]  ;;  %v127_v26 = vld [vmem:[#allocation11] sm:$0xff] }
  0x4f   :  { %1387 = vmatpush3.msra.mxu0 %v123_v3  ;;  %1397 = vmatprep.subr.mxu1 %v123_v3  ;;  %v1849_v34 = vld [vmem:[%s1917_s7] ss:$0 sm:$0xff]  ;;  %s1694_s7 = smov [#allocation13]  }
  0x50   :  { %1388 = vmatprep.subr.mxu0 %v122_v4  ;;  %1398 = vmatpush3.msra.mxu1 %v123_v3  ;;  %v1858_v43 = vld [vmem:[%s1918_s8] sm:$0xff]  ;;  %s1261_s8 = sshll.u32 %s1694_s7, 4  ;;  %s1262_s8 = int_to_ptr.vmem [resolvable:$true] %s1261_s8 }
  0x51   :  { %1389 = vmatpush3.msra.mxu0 %v122_v4  ;;  %1399 = vmatprep.subr.mxu1 %v122_v4  ;;  %s1632_s26 = scalar_lea.vmem %s1262_s8, 768  ;;  %p1637_p3 = scmp.lt.s32.totalorder %s1262_s8, %s1262_s8 }
  0x52   :  { %1391 = vmatmul.mubr.msk.f32.vlgmr.msra.gmra.mxu0 %vm135_vm0, %v134_v5  ;;  %1400 = vmatpush3.msra.mxu1 %v122_v4  ;;  %p1633_p2 = scmp.ne.s32.totalorder %s1262_s8, %s1632_s26  ;;  %p1638_p4 = scmp.lt.s32.totalorder %s1632_s26, %s1632_s26 }
  0x53   :  { %1401 = vmatprep.mubr.msk.f32.mxu1 %vm135_vm0, %v217_v6  ;;  %1408 = vmatprep.mubr.msk.f32.mxu0 %vm306_vm1, %v1791_v8 }
  0x54   :  { %1402 = vmatmul.mubr.msk.f32.vlgmr.msra.gmra.mxu1 %vm135_vm0, %v218_v7  ;;  %p1639_p5 = por %p1638_p4, %p1637_p3 }
  0x55   :  { %1415 = vmatprep.mubr.msk.f32.mxu1 %vm306_vm1, %v1791_v8 }
  0x56   :  { %p1640_p6 = pnand %p1639_p5, %p1633_p2 }
 0x112   :  { %v1392_v9 = vpop.f32.mrf.mxu0 }
 0x113   :  { %1404 = vmatprep.subr.mxu0 %v1392_v9 }
 0x114   :  { %v208_v10 = vpop.f32.mrf.mxu0  ;;  %1405 = vmatpush3.msra.mxu0 %v1392_v9  ;;  %v1403_v12 = vpop.f32.mrf.mxu1 }
 0x115   :  { %1406 = vmatprep.subr.mxu0 %v208_v10  ;;  %1411 = vmatprep.subr.mxu1 %v1403_v12 }
 0x116   :  { %1407 = vmatpush3.msra.mxu0 %v208_v10  ;;  %v291_v13 = vpop.f32.mrf.mxu1  ;;  %1412 = vmatpush3.msra.mxu1 %v1403_v12 }
 0x117   :  { %1409 = vmatmul.mubr.msk.f32.vlgmr.msra.gmra.mxu0 %vm306_vm1, %v1797_v11  ;;  %1418 = vmatprep.subr.mxu0 %v1392_v9 }
 0x118   :  { %1419 = vmatpush3.msra.mxu0 %v1392_v9  ;;  %1413 = vmatprep.subr.mxu1 %v291_v13 }
 0x119   :  { %1420 = vmatprep.subr.mxu0 %v208_v10  ;;  %1414 = vmatpush3.msra.mxu1 %v291_v13 }
 0x11a   :  { %1421 = vmatpush3.msra.mxu0 %v208_v10  ;;  %1416 = vmatmul.mubr.msk.f32.vlgmr.msra.gmra.mxu1 %vm306_vm1, %v1797_v11 }
 0x11b   :  { %1429 = vmatprep.mubr.msk.f32.mxu1 %vm306_vm1, %v1791_v8  ;;  %1422 = vmatprep.mubr.msk.f32.mxu0 %vm306_vm1, %v1805_v14 }
 0x11c   :  { %1423 = vmatmul.mubr.msk.f32.vlgmr.msra.gmra.mxu0 %vm306_vm1, %v1807_v15  ;;  %1432 = vmatprep.subr.mxu0 %v1813_v16 }
 0x11d   :  { %1433 = vmatpush3.msra.mxu0 %v1813_v16 }
 0x11e   :  { %1434 = vmatprep.subr.mxu0 %v1815_v17 }
 0x11f   :  { %1435 = vmatpush3.msra.mxu0 %v1815_v17 }
 0x120   :  { %1436 = vmatprep.subr.mxu0 %v1830_v25 }
 0x121   :  { %1437 = vmatpush3.msra.mxu0 %v1830_v25 }
 0x122   :  { %1438 = vmatprep.subr.mxu0 %v127_v26 }
 0x123   :  { %1439 = vmatpush3.msra.mxu0 %v127_v26 }
 0x124   :  { %1457 = vmatprep.subr.mxu0 %v1813_v16 }
 0x1d7   :  { %v1410_v19 = vpop.f32.mrf.mxu0 }
 0x1d8   :  { %v385_v20 = vadd.f32 %v1410_v19, %v1824_v18 }
 0x1d9   :  { %v379_v21 = vpop.f32.mrf.mxu0 }
 0x1da   :  { %v389_v22 = vmax.f32 %v385_v20, 0.0  ;;  %v380_v23 = vadd.f32 %v1824_v18, %v379_v21  ;;  %v1417_v27 = vpop.f32.mrf.mxu1 }
 0x1db   :  { %v462_v37 = vadd.f32 %v1417_v27, %v1824_v18 }
 0x1dc   :  { %v388_v24 = vmax.f32 %v380_v23, 0.0  ;;  %1425 = vmatprep.subr.mxu1 %v389_v22  ;;  %v456_v28 = vpop.f32.mrf.mxu1  ;;  %v1424_v32 = vpop.f32.mrf.mxu0 }
 0x1dd   :  { %1426 = vmatpush3.msra.mxu1 %v389_v22  ;;  %v457_v41 = vadd.f32 %v1824_v18, %v456_v28  ;;  %v466_v44 = vmax.f32 %v462_v37, 0.0  ;;  %v545_v52 = vadd.f32 %v1424_v32, %v1824_v18 }
 0x1de   :  { %1427 = vmatprep.subr.mxu1 %v388_v24  ;;  %v539_v33 = vpop.f32.mrf.mxu0 }
 0x1df   :  { %1428 = vmatpush3.msra.mxu1 %v388_v24  ;;  %v465_v45 = vmax.f32 %v457_v41, 0.0  ;;  %v540_v56 = vadd.f32 %v1824_v18, %v539_v33  ;;  %v549_v58 = vmax.f32 %v545_v52, 0.0 }
 0x1e0   :  { %1430 = vmatmul.mubr.msk.f32.vlgmr.msra.gmra.mxu1 %vm306_vm1, %v1797_v11  ;;  %1443 = vmatprep.subr.mxu1 %v1692_v31 }
 0x1e1   :  { %1447 = vmatprep.mubr.msk.f32.mxu1 %vm1693_vm2, %v1692_v31  ;;  %v548_v59 = vmax.f32 %v540_v56, 0.0 }
 0x2a0   :  { %v1431_v29 = vpop.f32.mrf.mxu1 }
 0x2a2   :  { %v616_v30 = vpop.f32.mrf.mxu1 }
 0x2a3   :  { %1440 = vmatprep.mubr.msk.f32.mxu0 %vm135_vm0, %v616_v30 }
 0x2a4   :  { %1441 = vmatmul.mubr.msk.f32.vlgmr.msra.gmra.mxu0 %vm135_vm0, %v1431_v29 }
 0x2a5   :  { %1458 = vmatpush3.msra.mxu0 %v1813_v16 }
 0x2a6   :  { %1459 = vmatprep.subr.mxu0 %v1815_v17 }
 0x2a7   :  { %1460 = vmatpush3.msra.mxu0 %v1815_v17 }
 0x2a8   :  { %1461 = vmatprep.subr.mxu0 %v1830_v25 }
 0x2a9   :  { %1462 = vmatpush3.msra.mxu0 %v1830_v25 }
 0x2aa   :  { %1463 = vmatprep.subr.mxu0 %v127_v26 }
 0x2ab   :  { %1464 = vmatpush3.msra.mxu0 %v127_v26 }
 0x2ac   :  { %1482 = vmatprep.subr.mxu0 %v1813_v16 }
 0x364   :  { %v1442_v35 = vpop.f32.mrf.mxu0 }
 0x365   :  { %v709_v36 = vadd.f32 %v1442_v35, %v1849_v34 }
 0x366   :  { %v703_v38 = vpop.f32.mrf.mxu0 }
 0x367   :  { %v713_v39 = vmax.f32 %v709_v36, 0.0  ;;  %v704_v40 = vadd.f32 %v1849_v34, %v703_v38 }
 0x369   :  { %715 = vst [vmem:[#allocation13 + $0x8] sm:$0xff] %v713_v39  ;;  %v712_v42 = vmax.f32 %v704_v40, 0.0  ;;  %1444 = vmatpush3.msra.mxu1 %v713_v39 }
 0x36a   :  { %1445 = vmatprep.subr.mxu1 %v1692_v31 }
 0x36b   :  { %714 = vst [vmem:[#allocation13] sm:$0xff] %v712_v42  ;;  %1446 = vmatpush3.msra.mxu1 %v712_v42 }
 0x36c   :  { %1448 = vmatmul.mubr.msk.f32.vlgmr.msra.gmra.mxu1 %vm306_vm1, %v1858_v43  ;;  %1450 = vmatprep.subr.mxu1 %v466_v44 }
 0x36d   :  { %1451 = vmatpush3.msra.mxu1 %v466_v44  ;;  %1454 = vmatprep.mubr.msk.f32.mxu1 %vm306_vm1, %v1791_v8 }
 0x36e   :  { %1452 = vmatprep.subr.mxu1 %v465_v45 }
 0x36f   :  { %1453 = vmatpush3.msra.mxu1 %v465_v45 }
 0x370   :  { %1455 = vmatmul.mubr.msk.f32.vlgmr.msra.gmra.mxu1 %vm306_vm1, %v1797_v11  ;;  %1468 = vmatprep.subr.mxu1 %v1692_v31 }
 0x371   :  { %1472 = vmatprep.mubr.msk.f32.mxu1 %vm1693_vm2, %v1692_v31 }
 0x42c   :  { %v785_v46 = vpop.f32.mrf.mxu1 }
 0x42d   :  { %789 = vst [vmem:[#allocation14] sm:$0xff] %v785_v46 }
 0x42e   :  { %v1449_v47 = vpop.f32.mrf.mxu1 }
 0x430   :  { %v1456_v48 = vpop.f32.mrf.mxu1 }
 0x432   :  { %v856_v49 = vpop.f32.mrf.mxu1 }
 0x433   :  { %1465 = vmatprep.mubr.msk.f32.mxu0 %vm135_vm0, %v856_v49 }
 0x434   :  { %1466 = vmatmul.mubr.msk.f32.vlgmr.msra.gmra.mxu0 %vm135_vm0, %v1456_v48 }
 0x435   :  { %1483 = vmatpush3.msra.mxu0 %v1813_v16 }
 0x436   :  { %1484 = vmatprep.subr.mxu0 %v1815_v17 }
 0x437   :  { %1485 = vmatpush3.msra.mxu0 %v1815_v17 }
 0x438   :  { %1486 = vmatprep.subr.mxu0 %v1830_v25 }
 0x439   :  { %1487 = vmatpush3.msra.mxu0 %v1830_v25 }
 0x43a   :  { %1488 = vmatprep.subr.mxu0 %v127_v26 }
 0x43b   :  { %1489 = vmatpush3.msra.mxu0 %v127_v26 }
 0x4f4   :  { %v1467_v50 = vpop.f32.mrf.mxu0 }
 0x4f5   :  { %v943_v51 = vadd.f32 %v1467_v50, %v1849_v34 }
 0x4f6   :  { %v937_v53 = vpop.f32.mrf.mxu0 }
 0x4f7   :  { %v947_v54 = vmax.f32 %v943_v51, 0.0  ;;  %v938_v55 = vadd.f32 %v1849_v34, %v937_v53 }
 0x4f9   :  { %950 = vst [vmem:[#allocation13 + $0x18] sm:$0xff] %v947_v54  ;;  %v946_v57 = vmax.f32 %v938_v55, 0.0  ;;  %1469 = vmatpush3.msra.mxu1 %v947_v54 }
 0x4fa   :  { %1470 = vmatprep.subr.mxu1 %v1692_v31 }
 0x4fb   :  { %949 = vst [vmem:[#allocation13 + $0x10] sm:$0xff] %v946_v57  ;;  %1471 = vmatpush3.msra.mxu1 %v946_v57 }
 0x4fc   :  { %1473 = vmatmul.mubr.msk.f32.vlgmr.msra.gmra.mxu1 %vm306_vm1, %v1858_v43  ;;  %1475 = vmatprep.subr.mxu1 %v549_v58 }
 0x4fd   :  { %1476 = vmatpush3.msra.mxu1 %v549_v58  ;;  %1479 = vmatprep.mubr.msk.f32.mxu1 %vm306_vm1, %v1805_v14 }
 0x4fe   :  { %1477 = vmatprep.subr.mxu1 %v548_v59 }
 0x4ff   :  { %1478 = vmatpush3.msra.mxu1 %v548_v59 }
 0x500   :  { %1480 = vmatmul.mubr.msk.f32.vlgmr.msra.gmra.mxu1 %vm306_vm1, %v1807_v15  ;;  %1493 = vmatprep.subr.mxu1 %v1692_v31 }
 0x501   :  { %1497 = vmatprep.mubr.msk.f32.mxu1 %vm1693_vm2, %v1692_v31 }
 0x5bc   :  { %v1017_v60 = vpop.f32.mrf.mxu1 }
 0x5bd   :  { %1022 = vst [vmem:[#allocation14 + $0x8] sm:$0xff] %v1017_v60 }
 0x5be   :  { %v1474_v61 = vpop.f32.mrf.mxu1 }
 0x5c0   :  { %v1481_v62 = vpop.f32.mrf.mxu1 }
 0x5c2   :  { %v1089_v63 = vpop.f32.mrf.mxu1 }
 0x5c3   :  { %1490 = vmatprep.mubr.msk.f32.mxu0 %vm135_vm0, %v1089_v63 }
 0x5c4   :  { %1491 = vmatmul.mubr.msk.f32.vlgmr.msra.gmra.mxu0 %vm135_vm0, %v1481_v62 }
 0x684   :  { %v1492_v0 = vpop.f32.mrf.mxu0 }
 0x685   :  { %v1176_v1 = vadd.f32 %v1492_v0, %v1849_v34 }
 0x686   :  { %v1170_v2 = vpop.f32.mrf.mxu0 }
 0x687   :  { %v1180_v3 = vmax.f32 %v1176_v1, 0.0  ;;  %v1171_v4 = vadd.f32 %v1849_v34, %v1170_v2 }
 0x689   :  { %1183 = vst [vmem:[#allocation13 + $0x28] sm:$0xff] %v1180_v3  ;;  %v1179_v5 = vmax.f32 %v1171_v4, 0.0  ;;  %1494 = vmatpush3.msra.mxu1 %v1180_v3 }
 0x68a   :  { %1495 = vmatprep.subr.mxu1 %v1692_v31 }
 0x68b   :  { %1182 = vst [vmem:[#allocation13 + $0x20] sm:$0xff] %v1179_v5  ;;  %1496 = vmatpush3.msra.mxu1 %v1179_v5 }
 0x68c   :  { %1498 = vmatmul.mubr.msk.f32.vlgmr.msra.gmra.mxu1 %vm306_vm1, %v1858_v43 }
 0x68d   :  { %1643 = shalt.err (!%p1640_p6)
}
 0x68e   :  { %1267 = dma.vmem_to_hbm [thread:$0]  %s1262_s8, 768, %s1919_s9, [#allocation4], %s1686_s18, %s1686_s18, %s1687_s19  }
 0x68f   :  { %s1695_s1 = smov [#allocation14]  }
 0x690   :  { %s1273_s29 = sshll.u32 %s1695_s1, 4  ;;  %s1274_s29 = int_to_ptr.vmem [resolvable:$true] %s1273_s29 }
 0x691   :  { %s1652_s30 = scalar_lea.vmem %s1274_s29, 384  ;;  %p1657_p8 = scmp.lt.s32.totalorder %s1274_s29, %s1274_s29 }
 0x692   :  { %p1653_p7 = scmp.ne.s32.totalorder %s1274_s29, %s1652_s30  ;;  %p1658_p9 = scmp.lt.s32.totalorder %s1652_s30, %s1652_s30 }
 0x694   :  { %p1659_p10 = por %p1658_p9, %p1657_p8 }
 0x696   :  { %p1660_p11 = pnand %p1659_p10, %p1653_p7 }
 0x74c   :  { %v1250_v6 = vpop.f32.mrf.mxu1 }
 0x74d   :  { %1255 = vst [vmem:[#allocation14 + $0x10] sm:$0xff] %v1250_v6 }
 0x74e   :  { %v1499_v7 = vpop.f32.mrf.mxu1 }
 0x74f   :  { %1663 = shalt.err (!%p1660_p11)
}
 0x750   :  { %1279 = dma.vmem_to_hbm [thread:$0]  %s1274_s29, 384, %s1920_s10, [#allocation15], %s1686_s18, %s1686_s18, %s1687_s19  }
 0x751   :  { %1680 = dma.done.wait [#allocation4], 768  }
 0x752   :  { %1681 = vsyncadd [#allocation4], 4294966528 }
 0x753   :  { %1682 = dma.done.wait [#allocation15], 384  }
 0x754   :  { %1683 = vsyncadd [#allocation15], 4294966912 }
 0x755   :  { %1286 = vsyncpa [#allocation3], 1 }
 0x756   :  { %1287 = vsyncpa [#allocation6], 1 }
 0x757   :  { %1288 = vsyncpa [#allocation9], 1 }
 0x758   :  { %1289 = vsyncpa [#allocation12], 1 }
 0x759   :  { %1290 = vsyncpa [#allocation4], 1 }
 0x75a   :  { %1291 = vsyncpa [#allocation15], 1 }

</bundles_post_ra>
